<compile_context>
chip_gen: v5e
topology: v5e:2x2
jax: 0.10.0
libtpu: 0.0.40
codegen_flags: <defaults>
</compile_context>

<pallas_src>
import functools

import jax
import jax.numpy as jnp
from jax.experimental import pallas as pl
from jax.experimental.pallas import tpu as pltpu


# ----------------------------------------------------------------------------
# Kernel
# ----------------------------------------------------------------------------
def _egonce_kernel(x_ref, m_ref, loss_ref,
                   col_num_ref, col_den_ref, row_acc_ref,
                   *, inv_temp, inv_n):
    i = pl.program_id(0)

    @pl.when(i == 0)
    def _():
        col_num_ref[...] = jnp.zeros_like(col_num_ref)
        col_den_ref[...] = jnp.zeros_like(col_den_ref)
        row_acc_ref[...] = jnp.zeros_like(row_acc_ref)

    # Logits with the STATIC shift c = 1/temperature (x in [-1, 1]); the shift
    # cancels exactly in log(num) - log(den) on both sides, so no softmax
    # normalization and no max pass are needed.
    xf = x_ref[...].astype(jnp.float32)
    e = jnp.exp((xf - 1.0) * inv_temp)                 # exp(x/t - 1/t)
    em = e * m_ref[...].astype(jnp.float32)            # single i8->f32 cast + mul

    # i side: softmax over rows of x, masked log-sum via the log identity
    #   log(sum(softmax(l) * m)) = log(sum(exp(l - c) * m)) - log(sum(exp(l - c)))
    num_i = jnp.sum(em, axis=1, keepdims=True)         # (TM, 1)
    den_i = jnp.sum(e, axis=1, keepdims=True)          # (TM, 1)
    row_acc_ref[...] += jnp.sum(jnp.log(num_i) - jnp.log(den_i), keepdims=True)

    # j side: softmax over rows of x.T == columns of x.  Mask symmetry
    # (mask == mask.T for EgoNCE's Gram masks) lets the same em tile feed the
    # column reductions; accumulate partial column sums across row tiles.
    col_num_ref[...] += jnp.sum(em, axis=0, keepdims=True)   # (1, N)
    col_den_ref[...] += jnp.sum(e, axis=0, keepdims=True)    # (1, N)

    @pl.when(i == pl.num_programs(0) - 1)
    def _():
        col = jnp.sum(jnp.log(col_num_ref[...]) - jnp.log(col_den_ref[...]),
                      keepdims=True)                   # (1, 1)
        loss_ref[...] = -(row_acc_ref[...] + col) * inv_n


# ----------------------------------------------------------------------------
# Wrapper
# ----------------------------------------------------------------------------
def _vmem_capacity_bytes():
    try:
        info = pltpu.get_tpu_info()
        for name in ("vmem_capacity_bytes", "vmem_size_bytes", "vmem_bytes"):
            v = getattr(info, name, None)
            if v:
                return int(v)
    except Exception:
        pass
    return 64 << 20   # conservative default: v7x per-TensorCore VMEM


def _est_vmem_bytes(tm, n, x_itemsize):
    tm_sub = -(-tm // 8) * 8
    n_lane = -(-n // 128) * 128
    tile = tm_sub * n_lane
    in_bytes = 2 * tile * x_itemsize + 2 * tile         # double-buffered x + i8 mask
    work = 4 * tile * 4                                 # live f32 temporaries
    scratch = 2 * 8 * n_lane * 4 + 1024                 # column accumulators + row acc
    return in_bytes + work + scratch


def _choose_block_rows(n, x_itemsize, budget):
    # Single block if it fits (or if N is not tileable); otherwise the largest
    # multiple-of-32 divisor of N whose per-step footprint fits the budget
    # (32 satisfies the sublane minimum for f32/bf16/int8 tiles).
    if n % 32 != 0 or _est_vmem_bytes(n, n, x_itemsize) <= budget:
        return n
    for cand in (2048, 1024, 512, 256, 128, 64, 32):
        if cand < n and n % cand == 0 and _est_vmem_bytes(cand, n, x_itemsize) <= budget:
            return cand
    return n   # TODO(synk): pad / two-level tiling when N has no good divisor


def egonce(x, mask_v, mask_n, *, temperature=0.05, noun=True, verb=True,
           block_rows=None):
    """Pallas implementation of EgoNCE.forward.

    Returns (loss_scalar, mask_bool [N, N], temperature), matching the PyTorch
    module's return tuple.
    """
    n = x.shape[0]
    assert x.shape == (n, n) and mask_v.shape == (n, n) and mask_n.shape == (n, n)

    # Combined mask in pure bool arithmetic (no f32 temporaries / f32 eye /
    # transposed copies).  The kernel relies on this mask being symmetric,
    # which holds for EgoNCE's Gram-matrix masks.
    eye = jnp.eye(n, dtype=jnp.bool_)
    if noun and verb:
        mask_bool = ((mask_v != 0) & (mask_n != 0)) | eye
    elif noun and (not verb):
        mask_bool = (mask_n != 0) | eye
    elif verb and (not noun):
        mask_bool = (mask_v != 0) | eye
    else:
        mask_bool = eye
    mask_i8 = mask_bool.astype(jnp.int8)   # fuses with the line above in XLA

    cap = _vmem_capacity_bytes()
    budget = max(8 << 20, min(cap // 2, 48 << 20))
    itemsize = jnp.dtype(x.dtype).itemsize
    if block_rows is None:
        tm = _choose_block_rows(n, itemsize, budget)
    else:
        tm = int(block_rows)
        assert tm == n or (n % tm == 0 and tm % 32 == 0), "bad block_rows"
    n_tiles = pl.cdiv(n, tm)

    est = _est_vmem_bytes(tm, n, itemsize)
    vmem_bytes = int(min(max(est + (4 << 20), 8 << 20), cap - (2 << 20)))

    kernel = functools.partial(
        _egonce_kernel,
        inv_temp=float(1.0 / temperature),
        inv_n=float(1.0 / n),
    )

    grid_spec = pltpu.PrefetchScalarGridSpec(
        num_scalar_prefetch=0,
        grid=(n_tiles,),
        in_specs=[
            pl.BlockSpec((tm, n), lambda i: (i, 0)),   # x row tile (native dtype)
            pl.BlockSpec((tm, n), lambda i: (i, 0)),   # combined mask row tile (i8)
        ],
        out_specs=pl.BlockSpec((1, 1), lambda i: (0, 0)),
        scratch_shapes=[
            pltpu.VMEM((1, n), jnp.float32),   # j-side column numerator accumulator
            pltpu.VMEM((1, n), jnp.float32),   # j-side column denominator accumulator
            pltpu.VMEM((1, 1), jnp.float32),   # running i-side log-sum
        ],
    )

    loss = pl.pallas_call(
        kernel,
        out_shape=jax.ShapeDtypeStruct((1, 1), jnp.float32),
        grid_spec=grid_spec,
        compiler_params=pltpu.CompilerParams(
            dimension_semantics=("arbitrary",),   # row axis carries the accumulators
            vmem_limit_bytes=vmem_bytes),
    )(x, mask_i8)

    return loss[0, 0], mask_bool, temperature


# ----------------------------------------------------------------------------
# Demo / correctness check
# ----------------------------------------------------------------------------
if __name__ == "__main__":
    def reference(x, mask_v, mask_n, temperature):
        # Pure-JAX transcription of the torch forward.
        n = x.shape[0]
        eye = jnp.eye(n, dtype=jnp.float32)
        m = mask_v * mask_n + eye
        mb = m > 0
        i_sm = jax.nn.softmax(x / temperature, axis=1)
        j_sm = jax.nn.softmax(x.T / temperature, axis=1)
        loss_i = jnp.sum(jnp.log(jnp.sum(i_sm * mb, axis=1))) / n
        loss_j = jnp.sum(jnp.log(jnp.sum(j_sm * mb, axis=1))) / n
        return -loss_i - loss_j, mb

    key = jax.random.PRNGKey(0)
    # (N, block_rows): exercises both the single-block and the row-tiled path.
    for N, br in ((8, None), (64, 32)):
        kx, kv, kn, key = jax.random.split(key, 4)
        # Cosine-similarity matrix in [-1, 1] (module docstring assumption).
        x = jax.random.uniform(kx, (N, N), jnp.float32, minval=-1.0, maxval=1.0)
        # Verb / noun class memberships -> symmetric Gram co-occurrence masks,
        # exactly as EgoVLPv2 builds them (v @ v.T, n @ n.T).
        CV, CN = 5, 7
        v_cls = (jax.random.uniform(kv, (N, CV)) > 0.6).astype(jnp.float32)
        n_cls = (jax.random.uniform(kn, (N, CN)) > 0.6).astype(jnp.float32)
        mask_v = v_cls @ v_cls.T
        mask_n = n_cls @ n_cls.T

        loss, mask_bool, temp = egonce(x, mask_v, mask_n, temperature=0.05,
                                       noun=True, verb=True, block_rows=br)
        jax.block_until_ready((loss, mask_bool))

        loss_ref, mb_ref = reference(x, mask_v, mask_n, 0.05)
        assert jnp.allclose(loss, loss_ref, rtol=1e-5, atol=1e-5), (N, loss, loss_ref)
        assert bool(jnp.all(mask_bool == mb_ref)), N
        assert temp == 0.05

    print("KERNEL_OK")
</pallas_src>

<mosaic_0001>
module attributes {stable_mosaic.version = 11 : i64} {
  func.func @_egonce_kernel(%arg0: i32, %arg1: memref<8x8xf32, #tpu.memory_space<vmem>>, %arg2: memref<8x8xi8, #tpu.memory_space<vmem>>, %arg3: memref<1x1xf32, #tpu.memory_space<vmem>>, %arg4: memref<1x8xf32, #tpu.memory_space<vmem>>, %arg5: memref<1x8xf32, #tpu.memory_space<vmem>>, %arg6: memref<1x1xf32, #tpu.memory_space<vmem>>) attributes {dimension_semantics = [#tpu.dimension_semantics<arbitrary>], iteration_bounds = array<i64: 1>, scalar_prefetch = 0 : i64, scratch_operands = 3 : i64, tpu.core_type = #tpu.core_type<tc>, window_params = [{transform_indices = @transform_0, window_bounds = array<i64: 8, 8>}, {transform_indices = @transform_1, window_bounds = array<i64: 8, 8>}, {pipeline_mode = #tpu.pipeline_mode<synchronous>, transform_indices = @transform_2, window_bounds = array<i64: 1, 1>}]} {
    %c0_i32 = arith.constant 0 : i32
    %0 = arith.cmpi eq, %arg0, %c0_i32 : i32
    %1 = arith.extui %0 : i1 to i32
    %c0_i32_0 = arith.constant 0 : i32
    %2 = arith.cmpi ne, %1, %c0_i32_0 : i32
    scf.if %2 {
      %cst_24 = arith.constant 0.000000e+00 : f32
      %40 = vector.broadcast %cst_24 : f32 to vector<1x8xf32>
      %c0_25 = arith.constant 0 : index
      %c0_26 = arith.constant 0 : index
      %41 = vector.load %arg4[%c0_25, %c0_26] : memref<1x8xf32, #tpu.memory_space<vmem>>, vector<1x8xf32>
      tpu.vector_store %arg4[%c0_25, %c0_26], %40 {strides = array<i32>} : memref<1x8xf32, #tpu.memory_space<vmem>>, vector<1x8xf32>,
      %cst_27 = arith.constant 0.000000e+00 : f32
      %42 = vector.broadcast %cst_27 : f32 to vector<1x8xf32>
      %c0_28 = arith.constant 0 : index
      %c0_29 = arith.constant 0 : index
      %43 = vector.load %arg5[%c0_28, %c0_29] : memref<1x8xf32, #tpu.memory_space<vmem>>, vector<1x8xf32>
      tpu.vector_store %arg5[%c0_28, %c0_29], %42 {strides = array<i32>} : memref<1x8xf32, #tpu.memory_space<vmem>>, vector<1x8xf32>,
      %cst_30 = arith.constant 0.000000e+00 : f32
      %44 = vector.broadcast %cst_30 : f32 to vector<1x1xf32>
      %c0_31 = arith.constant 0 : index
      %c0_32 = arith.constant 0 : index
      %45 = vector.load %arg6[%c0_31, %c0_32] : memref<1x1xf32, #tpu.memory_space<vmem>>, vector<1x1xf32>
      tpu.vector_store %arg6[%c0_31, %c0_32], %44 {strides = array<i32>} : memref<1x1xf32, #tpu.memory_space<vmem>>, vector<1x1xf32>,
    } else {
    }
    %c0 = arith.constant 0 : index
    %c0_1 = arith.constant 0 : index
    %3 = vector.load %arg1[%c0, %c0_1] : memref<8x8xf32, #tpu.memory_space<vmem>>, vector<8x8xf32>
    %cst = arith.constant 1.000000e+00 : f32
    %4 = vector.broadcast %cst : f32 to vector<8x8xf32>
    %5 = arith.subf %3, %4 : vector<8x8xf32>
    %cst_2 = arith.constant 2.000000e+01 : f32
    %6 = vector.broadcast %cst_2 : f32 to vector<8x8xf32>
    %7 = arith.mulf %5, %6 : vector<8x8xf32>
    %8 = math.exp %7 : vector<8x8xf32>
    %c0_3 = arith.constant 0 : index
    %c0_4 = arith.constant 0 : index
    %9 = vector.load %arg2[%c0_3, %c0_4] : memref<8x8xi8, #tpu.memory_space<vmem>>, vector<8x8xi8>
    %10 = arith.sitofp %9 : vector<8x8xi8> to vector<8x8xf32>
    %11 = arith.mulf %8, %10 : vector<8x8xf32>
    %cst_5 = arith.constant dense<0.000000e+00> : vector<8xf32>
    %12 = vector.multi_reduction <add>, %11, %cst_5 [1] : vector<8x8xf32> to vector<8xf32>
    %13 = vector.shape_cast %12 : vector<8xf32> to vector<8x1xf32>
    %cst_6 = arith.constant dense<0.000000e+00> : vector<8xf32>
    %14 = vector.multi_reduction <add>, %8, %cst_6 [1] : vector<8x8xf32> to vector<8xf32>
    %15 = vector.shape_cast %14 : vector<8xf32> to vector<8x1xf32>
    %c0_7 = arith.constant 0 : index
    %c0_8 = arith.constant 0 : index
    %16 = vector.load %arg6[%c0_7, %c0_8] : memref<1x1xf32, #tpu.memory_space<vmem>>, vector<1x1xf32>
    %17 = math.log %13 : vector<8x1xf32>
    %18 = math.log %15 : vector<8x1xf32>
    %19 = arith.subf %17, %18 : vector<8x1xf32>
    %20 = vector.shape_cast %19 : vector<8x1xf32> to vector<1x8x1xf32>
    %cst_9 = arith.constant dense<0.000000e+00> : vector<1xf32>
    %21 = vector.multi_reduction <add>, %20, %cst_9 [1, 2] : vector<1x8x1xf32> to vector<1xf32>
    %22 = vector.shape_cast %21 : vector<1xf32> to vector<1x1x1xf32>
    %23 = vector.extract %22[0, 0, 0] : f32 from vector<1x1x1xf32>
    %24 = vector.broadcast %23 : f32 to vector<1x1xf32>
    %25 = arith.addf %16, %24 : vector<1x1xf32>
    %c0_10 = arith.constant 0 : index
    %c0_11 = arith.constant 0 : index
    %26 = vector.load %arg6[%c0_10, %c0_11] : memref<1x1xf32, #tpu.memory_space<vmem>>, vector<1x1xf32>
    tpu.vector_store %arg6[%c0_10, %c0_11], %25 {strides = array<i32>} : memref<1x1xf32, #tpu.memory_space<vmem>>, vector<1x1xf32>,
    %c0_12 = arith.constant 0 : index
    %c0_13 = arith.constant 0 : index
    %27 = vector.load %arg4[%c0_12, %c0_13] : memref<1x8xf32, #tpu.memory_space<vmem>>, vector<1x8xf32>
    %cst_14 = arith.constant dense<0.000000e+00> : vector<8xf32>
    %28 = vector.multi_reduction <add>, %11, %cst_14 [0] : vector<8x8xf32> to vector<8xf32>
    %29 = vector.shape_cast %28 : vector<8xf32> to vector<1x8xf32>
    %30 = arith.addf %27, %29 : vector<1x8xf32>
    %c0_15 = arith.constant 0 : index
    %c0_16 = arith.constant 0 : index
    %31 = vector.load %arg4[%c0_15, %c0_16] : memref<1x8xf32, #tpu.memory_space<vmem>>, vector<1x8xf32>
    tpu.vector_store %arg4[%c0_15, %c0_16], %30 {strides = array<i32>} : memref<1x8xf32, #tpu.memory_space<vmem>>, vector<1x8xf32>,
    %c0_17 = arith.constant 0 : index
    %c0_18 = arith.constant 0 : index
    %32 = vector.load %arg5[%c0_17, %c0_18] : memref<1x8xf32, #tpu.memory_space<vmem>>, vector<1x8xf32>
    %cst_19 = arith.constant dense<0.000000e+00> : vector<8xf32>
    %33 = vector.multi_reduction <add>, %8, %cst_19 [0] : vector<8x8xf32> to vector<8xf32>
    %34 = vector.shape_cast %33 : vector<8xf32> to vector<1x8xf32>
    %35 = arith.addf %32, %34 : vector<1x8xf32>
    %c0_20 = arith.constant 0 : index
    %c0_21 = arith.constant 0 : index
    %36 = vector.load %arg5[%c0_20, %c0_21] : memref<1x8xf32, #tpu.memory_space<vmem>>, vector<1x8xf32>
    tpu.vector_store %arg5[%c0_20, %c0_21], %35 {strides = array<i32>} : memref<1x8xf32, #tpu.memory_space<vmem>>, vector<1x8xf32>,
    %c0_i32_22 = arith.constant 0 : i32
    %37 = arith.cmpi eq, %arg0, %c0_i32_22 : i32
    %38 = arith.extui %37 : i1 to i32
    %c0_i32_23 = arith.constant 0 : i32
    %39 = arith.cmpi ne, %38, %c0_i32_23 : i32
    scf.if %39 {
      %c0_24 = arith.constant 0 : index
      %c0_25 = arith.constant 0 : index
      %40 = vector.load %arg4[%c0_24, %c0_25] : memref<1x8xf32, #tpu.memory_space<vmem>>, vector<1x8xf32>
      %41 = math.log %40 : vector<1x8xf32>
      %c0_26 = arith.constant 0 : index
      %c0_27 = arith.constant 0 : index
      %42 = vector.load %arg5[%c0_26, %c0_27] : memref<1x8xf32, #tpu.memory_space<vmem>>, vector<1x8xf32>
      %43 = math.log %42 : vector<1x8xf32>
      %44 = arith.subf %41, %43 : vector<1x8xf32>
      %45 = vector.shape_cast %44 : vector<1x8xf32> to vector<1x1x8xf32>
      %cst_28 = arith.constant dense<0.000000e+00> : vector<1xf32>
      %46 = vector.multi_reduction <add>, %45, %cst_28 [1, 2] : vector<1x1x8xf32> to vector<1xf32>
      %47 = vector.shape_cast %46 : vector<1xf32> to vector<1x1x1xf32>
      %48 = vector.extract %47[0, 0, 0] : f32 from vector<1x1x1xf32>
      %49 = vector.broadcast %48 : f32 to vector<1x1xf32>
      %c0_29 = arith.constant 0 : index
      %c0_30 = arith.constant 0 : index
      %50 = vector.load %arg6[%c0_29, %c0_30] : memref<1x1xf32, #tpu.memory_space<vmem>>, vector<1x1xf32>
      %51 = arith.addf %50, %49 : vector<1x1xf32>
      %cst_31 = arith.constant 0.000000e+00 : f32
      %52 = vector.broadcast %cst_31 : f32 to vector<1x1xf32>
      %53 = arith.subf %52, %51 : vector<1x1xf32>
      %cst_32 = arith.constant 1.250000e-01 : f32
      %54 = vector.broadcast %cst_32 : f32 to vector<1x1xf32>
      %55 = arith.mulf %53, %54 : vector<1x1xf32>
      %c0_33 = arith.constant 0 : index
      %c0_34 = arith.constant 0 : index
      %56 = vector.load %arg3[%c0_33, %c0_34] : memref<1x1xf32, #tpu.memory_space<vmem>>, vector<1x1xf32>
      tpu.vector_store %arg3[%c0_33, %c0_34], %55 {strides = array<i32>} : memref<1x1xf32, #tpu.memory_space<vmem>>, vector<1x1xf32>,
    } else {
    }
    return
  }
  func.func @transform_0(%arg0: i32) -> (i32, i32) {
    %c0_i32 = arith.constant 0 : i32
    %c0_i32_0 = arith.constant 0 : i32
    return %arg0, %c0_i32 : i32, i32
  }
  func.func @transform_1(%arg0: i32) -> (i32, i32) {
    %c0_i32 = arith.constant 0 : i32
    %c0_i32_0 = arith.constant 0 : i32
    return %arg0, %c0_i32 : i32, i32
  }
  func.func @transform_2(%arg0: i32) -> (i32, i32) {
    %c0_i32 = arith.constant 0 : i32
    %c0_i32_0 = arith.constant 0 : i32
    %c0_i32_1 = arith.constant 0 : i32
    return %c0_i32, %c0_i32_0 : i32, i32
  }
}

</mosaic_0001>

<bundles_post_ra>
// kernel: tpu_custom_call.1
= control target key start
LH: loop header
LB: loop body
LE: loop exit
PB: predicated region body
PF: predicated region fallthrough
CT: control target
= control target key end

     0   :  { %7 = vsyncpa [#allocation6], 0  ;;  %s282_s0 = inlined_call_operand.hbm [shape: f32[8,8], index: 0, kind: input, shape index: {}]   ;;  %s283_s1 = inlined_call_operand.hbm [shape: s8[8,8], index: 1, kind: input, shape index: {}]   ;;  %s284_s2 = inlined_call_operand.hbm [shape: f32[1,1], index: 2, kind: output, shape index: {}]  }
   0x1   :  { %8 = vsyncpa [#allocation9], 0 }
   0x2   :  { %9 = vsyncpa [#allocation7], 0  ;;  %s15_s11 = sshll.u32 %s282_s0, 4  ;;  %s246_s12 = smov [#allocation5]   ;;  %s16_s11 = int_to_ptr.hbm [resolvable:$true] %s15_s11 }
   0x3   :  { %s17_s13 = sshll.u32 %s246_s12, 4  ;;  %s26_s16 = sshll.u32 %s283_s1, 4  ;;  %s18_s13 = int_to_ptr.vmem [resolvable:$true] %s17_s13  ;;  %s27_s16 = int_to_ptr.hbm [resolvable:$true] %s26_s16 }
   0x4   :  { %20 = dma.hbm_to_vmem [thread:$0]  %s16_s11, 128, %s18_s13, [#allocation6]  }
   0x5   :  { %s247_s17 = smov [#allocation8]  }
   0x6   :  { %s28_s18 = sshll.u32 %s247_s17, 4  ;;  %s29_s18 = int_to_ptr.vmem [resolvable:$true] %s28_s18 }
   0x7   :  { %31 = dma.hbm_to_vmem [thread:$0]  %s27_s16, 32, %s29_s18, [#allocation9]  }
   0x8   :  { %240 = dma.done.wait [#allocation6], 128  }
   0x9   :  { %241 = vsyncadd [#allocation6], 4294967168 }
   0xa   :  { %242 = dma.done.wait [#allocation9], 32  }
   0xb   :  { %243 = vsyncadd [#allocation9], 4294967264  ;;  %v49_v0 = vld [vmem:[#allocation5] sm:$0xff]  ;;  %v54_v3 = vld [vmem:[#allocation8] sm:$0x3]  ;;  %vm58_vm0 = vcmask 64512  }
   0xc   :  { %v149_v1 = vadd.f32 -1.0, %v49_v0  ;;  %v55_v5 = vunpack.c.0.s8 %v54_v3  ;;  %vm44_vm1 = vcmask 57344   ;;  %v248_v20 = vmov 0.0   ;;  %s249_s19 = smov [#allocation10]   ;;  %s138_s23 = sshll.u32 %s284_s2, 4  ;;  %s139_s23 = int_to_ptr.hbm [resolvable:$true] %s138_s23 }
   0xd   :  { %45 = vst.msk [vmem:[#allocation2] sm:$0x1] %vm44_vm1, %v248_v20  ;;  %vm71_vm2 = vcmask 7168   ;;  %vm47_vm3 = vcmask 0   ;;  %s136_s20 = sshll.u32 %s249_s19, 4  ;;  %s137_s20 = int_to_ptr.vmem [resolvable:$true] %s136_s20 }
   0xe   :  { %v51_v2 = vmul.f32 20.0, %v149_v1  ;;  %v56_v6 = vcvt.s32.f32 %v55_v5  ;;  %46 = vst.msk [vmem:[#allocation3] sm:$0x1] %vm44_vm1, %v248_v20 }
   0xf   :  { %48 = vst.msk [vmem:[#allocation4] sm:$0x1] %vm47_vm3, %v248_v20 }
  0x10   :  { %v52_v4 = vmul.f32 1.442695, %v51_v2 }
  0x12   :  { %158 = vpow2.f32 %v52_v4 }
  0x14   :  { %v86_v24 = vld [vmem:[#allocation2] sm:$0x1] }
  0x15   :  { %v96_v26 = vld [vmem:[#allocation3] sm:$0x1] }
  0x16   :  { %v65_v58 = vld [vmem:[#allocation4] sm:$0x1] }
  0x18   :  { %v159_v7 = vpop.eup %158 }
  0x19   :  { %v57_v8 = vmul.f32 %v159_v7, %v56_v6  ;;  %v62_v10 = vsel %vm58_vm0, %v159_v7, 0.0 }
  0x1a   :  { %v97_v12 = vrot.slane %v62_v10, 4 }
  0x1b   :  { %v59_v9 = vsel %vm58_vm0, %v57_v8, 0.0 }
  0x1c   :  { %60 = vadd.xlane.f32.xlu0 %v59_v9  ;;  %v87_v11 = vrot.slane %v59_v9, 4  ;;  %v98_v14 = vadd.f32 %v97_v12, %v62_v10 }
  0x1e   :  { %v88_v13 = vadd.f32 %v87_v11, %v59_v9  ;;  %v99_v16 = vrot.slane %v98_v14, 2 }
  0x20   :  { %v89_v15 = vrot.slane %v88_v13, 2  ;;  %v100_v18 = vadd.f32 %v99_v16, %v98_v14 }
  0x22   :  { %v90_v17 = vadd.f32 %v89_v15, %v88_v13  ;;  %v101_v21 = vrot.slane %v100_v18, 1 }
  0x24   :  { %63 = vadd.xlane.f32.xlu0 %v62_v10  ;;  %v91_v19 = vrot.slane %v90_v17, 1  ;;  %v102_v23 = vadd.f32 %v101_v21, %v100_v18 }
  0x26   :  { %v92_v22 = vadd.f32 %v91_v19, %v90_v17  ;;  %v103_v27 = vadd.f32 %v102_v23, %v96_v26 }
  0x28   :  { %v93_v25 = vadd.f32 %v92_v22, %v86_v24  ;;  %104 = vst.msk [vmem:[#allocation3] sm:$0x1] %vm44_vm1, %v103_v27 }
  0x2a   :  { %95 = vst.msk [vmem:[#allocation2] sm:$0x1] %vm44_vm1, %v93_v25 }
  0x2f   :  { %v111_v30 = vld [vmem:[#allocation3] sm:$0x1] }
  0x31   :  { %v108_v29 = vld [vmem:[#allocation2] sm:$0x1] }
  0x32   :  { %160 = vlog2.f32 %v108_v29 }
  0x38   :  { %v161_v32 = vpop.eup %160 }
  0x39   :  { %v110_v39 = vmul.f32 0.6931472, %v161_v32 }
  0x8f   :  { %v61_v28 = vpop.xlane.xlu0 %60 }
  0x90   :  { %162 = vlog2.f32 %v61_v28 }
  0x91   :  { %164 = vlog2.f32 %v111_v30 }
  0x96   :  { %v163_v33 = vpop.eup %162 }
  0x97   :  { %v64_v31 = vpop.xlane.xlu0 %63  ;;  %v165_v34 = vpop.eup %164  ;;  %v67_v36 = vmul.f32 0.6931472, %v163_v33 }
  0x98   :  { %166 = vlog2.f32 %v64_v31  ;;  %v113_v40 = vmul.f32 0.6931472, %v165_v34 }
  0x9a   :  { %v114_v42 = vsub.f32 %v110_v39, %v113_v40 }
  0x9c   :  { %v115_v43 = vsel %vm44_vm1, %v114_v42, 0.0 }
  0x9e   :  { %v167_v35 = vpop.eup %166 }
  0x9f   :  { %v69_v37 = vmul.f32 0.6931472, %v167_v35 }
  0xa1   :  { %v70_v38 = vsub.f32 %v67_v36, %v69_v37 }
  0xa3   :  { %v72_v41 = vsel %vm71_vm2, %v70_v38, 0.0 }
  0xa4   :  { %73 = vadd.xlane.f32.xlu1 %v72_v41 }
  0xac   :  { %116 = vadd.xlane.f32.xlu1 %v115_v43 }
 0x117   :  { %v74_v44 = vpop.xlane.xlu1 %73 }
 0x118   :  { %v75_v45 = vrot.slane %v74_v44, 4 }
 0x11a   :  { %v76_v46 = vadd.f32 %v75_v45, %v74_v44 }
 0x11c   :  { %v77_v47 = vrot.slane %v76_v46, 2 }
 0x11e   :  { %v78_v48 = vadd.f32 %v77_v47, %v76_v46 }
 0x11f   :  { %v117_v49 = vpop.xlane.xlu1 %116 }
 0x120   :  { %v118_v50 = vrot.slane %v117_v49, 4  ;;  %v79_v51 = vrot.slane %v78_v48, 1 }
 0x122   :  { %v119_v52 = vadd.f32 %v118_v50, %v117_v49  ;;  %v80_v53 = vadd.f32 %v79_v51, %v78_v48 }
 0x124   :  { %v120_v54 = vrot.slane %v119_v52, 2  ;;  %150 = vpush %v80_v53 }
 0x126   :  { %v121_v55 = vadd.f32 %v120_v54, %v119_v52 }
 0x128   :  { %v122_v56 = vrot.slane %v121_v55, 1 }
 0x12a   :  { %v123_v57 = vadd.f32 %v122_v56, %v121_v55 }
 0x12c   :  { %152 = vpush %v123_v57 }
 0x155   :  { %s151_s0 = spop %150 }
 0x156   :  { %v82_v59 = vstv %s151_s0 }
 0x157   :  { %v83_v60 = vadd.f32 %v82_v59, %v65_v58 }
 0x159   :  { %85 = vst.msk [vmem:[#allocation4] sm:$0x1] %vm47_vm3, %v83_v60 }
 0x15d   :  { %s153_s1 = spop %152 }
 0x15e   :  { %v125_v61 = vstv %s153_s1 }
 0x160   :  { %v126_v62 = vld [vmem:[#allocation4] sm:$0x1] }
 0x161   :  { %v127_v63 = vadd.f32 %v126_v62, %v125_v61 }
 0x163   :  { %v128_v0 = vsub.f32 0.0, %v127_v63 }
 0x165   :  { %v129_v1 = vmul.f32 0.125, %v128_v0 }
 0x167   :  { %130 = vst.msk [vmem:[#allocation10] sm:$0x1] %vm47_vm3, %v129_v1 }
 0x168   :  { %141 = dma.vmem_to_hbm [thread:$0]  %s137_s20, 16, %s139_s23, [#allocation7]  }
 0x169   :  { %244 = dma.done.wait [#allocation7], 16  }
 0x16a   :  { %245 = vsyncadd [#allocation7], 4294967280 }
 0x16b   :  { %146 = vsyncpa [#allocation6], 1 }
 0x16c   :  { %147 = vsyncpa [#allocation9], 1 }
 0x16d   :  { %148 = vsyncpa [#allocation7], 1 }

</bundles_post_ra>
